<compile_context>
chip_gen: v7x
topology: tpu7x:2x2x1
jax: 0.10.0
libtpu: 0.0.40
codegen_flags: <defaults>
</compile_context>

<pallas_src>
import functools

import numpy as np
import jax
import jax.numpy as jnp
from jax.experimental import pallas as pl
from jax.experimental.pallas import tpu as pltpu

_LANE = 128
_SUBLANE_F32 = 8
_MAX_ROW_TILE = 2048                    # 128-aligned cap on the (packed-)row tile
_TILE_VMEM_BUDGET = 40 * 1024 * 1024    # padded activation budget used for tile sizing
_VMEM_LIMIT_CAP = 48 * 1024 * 1024      # <= v7x 64 MiB physical, with Mosaic headroom
_PACK_ROWS = 8                          # batch rows packed per 128-lane row
_PACKED_DIM_CAP = 1024                  # widest packed feature dim we allow
_PACKED_PARAM_CAP = 8 * 1024 * 1024     # max padded packed-parameter VMEM


def _round_up(x, m):
    return ((x + m - 1) // m) * m


def _padded_bytes(rows, cols, dtype):
    """Physical VMEM bytes of a (rows, cols) block after (sublane, lane) padding."""
    itemsize = np.dtype(dtype).itemsize
    sublane = 32 // itemsize            # 8 for f32, 16 for bf16
    return (_round_up(max(int(rows), 1), sublane)
            * _round_up(max(int(cols), 1), _LANE) * itemsize)


def _num_tensorcores():
    """TensorCores per chip (v7x/v4 megacore have 2).  Purely a tiling heuristic."""
    try:
        kind = jax.devices()[0].device_kind.lower()
    except Exception:  # pragma: no cover - heuristic only
        return 1
    return 2 if ("v7" in kind or "v4" in kind) else 1


def prepare_dynamic_mlp_params(params, *, pack_rows=_PACK_ROWS):
    """One-time parameter prep (call once, reuse across forward calls).

    * Decides whether to pack `pack_rows` batch rows per 128-lane row: weights
      become block-diagonal kron(I_P, W), biases are tiled.  Auto-disabled when
      the packed dims / packed parameter footprint would be too large.
    * Stores weights in bf16 once (MXU operands); biases stay f32.
    """
    assert params, "need at least one layer"
    out_dim = params[-1][0].shape[1]
    assert out_dim == 1, "DynamicMLP's last layer must have out_features == 1"
    input_dim = params[0][0].shape[0]
    hidden = [w.shape[1] for w, _ in params]
    widest = max([input_dim] + hidden)

    pack = max(int(pack_rows), 1)
    if pack > 1:
        if widest * pack > _PACKED_DIM_CAP:
            pack = 1
        else:
            packed_bytes = sum(
                _padded_bytes(w.shape[0] * pack, w.shape[1] * pack, jnp.bfloat16)
                + _padded_bytes(1, w.shape[1] * pack, jnp.float32)
                for w, _ in params)
            if packed_bytes > _PACKED_PARAM_CAP:
                pack = 1

    flat = []
    if pack > 1:
        eye = jnp.eye(pack, dtype=jnp.float32)
        for w, b in params:
            flat.append(jnp.kron(eye, w.astype(jnp.float32)).astype(jnp.bfloat16))
            flat.append(jnp.tile(b.astype(jnp.float32), (1, pack)))
    else:
        for w, b in params:
            flat.append(w.astype(jnp.bfloat16))
            flat.append(b.astype(jnp.float32))
    flat = tuple(jax.device_put(p) for p in flat)

    return dict(
        flat_params=flat,
        num_layers=len(params),
        pack=pack,
        input_dim=input_dim,
        packed_input_dim=input_dim * pack,
        packed_widest=widest * pack,
        out_cols=out_dim * pack,        # width of the last packed layer (== pack)
    )


def _mlp_kernel(num_layers, x_ref, *refs):
    """Fused MLP for one row tile: (Linear -> ReLU)*(L-1) -> Linear.

    refs = (W1, b1, ..., W_L, b_L, out_ref).  Weights are bf16 MXU operands,
    biases f32; accumulation is f32.  The final (tb, out_cols) tile is transposed
    to (out_cols, tb) so the stores are lane-dense.
    """
    out_ref = refs[-1]
    param_refs = refs[:-1]

    h = x_ref[...]                                     # (tb, d_in), f32 or bf16
    for layer in range(num_layers):
        w = param_refs[2 * layer][...]                 # bf16 (d_in, d_out)
        b = param_refs[2 * layer + 1][...]             # f32  (1, d_out)
        h = jnp.dot(h.astype(jnp.bfloat16), w,
                    preferred_element_type=jnp.float32) + b
        if layer < num_layers - 1:
            h = jnp.maximum(h, 0.0)                    # ReLU; Dropout(p=0)/eval == identity
    # TODO(synk): training-mode dropout (p > 0) would need pltpu.prng_seed /
    # pltpu.prng_random_bits; forward() with p=0 / eval mode needs nothing.

    out_ref[...] = jnp.transpose(h).astype(out_ref.dtype)


def _choose_row_tile(n_rows, tile_bytes, num_tc, *, budget=_TILE_VMEM_BUDGET,
                     max_tile=_MAX_ROW_TILE):
    """Largest lane-aligned row tile within the padded VMEM budget, with a
    generation-aware grid-step heuristic (no forced split on 1-TC parts,
    >= 4 steps on megacore parts when the batch allows)."""
    if n_rows <= _LANE:
        return _round_up(n_rows, _SUBLANE_F32)         # single full-extent tile
    tb = _LANE
    cand = max_tile
    while cand >= _LANE:
        if tile_bytes(cand) <= budget:
            tb = cand
            break
        cand -= _LANE
    tb = min(tb, _round_up(n_rows, _LANE))
    if num_tc >= 2 and n_rows >= 4 * _LANE:
        # Megacore: >= 4 grid steps (>= 2 per TensorCore) so each core pipelines
        # the x DMA against compute and load stays balanced.
        per_quarter = max(_LANE, (((n_rows + 3) // 4) // _LANE) * _LANE)
        tb = min(tb, per_quarter)
    return tb


def dynamic_mlp_apply(x, prep, *, row_tile=None):
    """Runs the fused DynamicMLP kernel.  x: [B, input_dim]; prep from
    prepare_dynamic_mlp_params.  Returns [B, 1]."""
    B, input_dim = x.shape
    assert input_dim == prep["input_dim"]
    pack = prep["pack"]
    flat_params = prep["flat_params"]
    num_layers = prep["num_layers"]
    din_p = prep["packed_input_dim"]
    widest_p = prep["packed_widest"]
    out_cols = prep["out_cols"]

    n_rows = -(-B // pack)                              # packed rows to process
    num_tc = _num_tensorcores()

    def tile_bytes(tb):
        byt = 2 * _padded_bytes(tb, din_p, x.dtype)            # x (double-buffered)
        byt += 2 * _padded_bytes(out_cols, tb, jnp.float32)    # out (double-buffered)
        byt += 2 * _padded_bytes(tb, widest_p, jnp.float32)    # live f32 intermediates
        byt += _padded_bytes(tb, widest_p, jnp.bfloat16)       # bf16 MXU operand copy
        return byt

    tb = row_tile if row_tile is not None else _choose_row_tile(n_rows, tile_bytes, num_tc)
    n_tiles = -(-n_rows // tb)
    r_pad = n_tiles * tb
    b_pad = r_pad * pack

    x_p = x if b_pad == B else jnp.pad(x, ((0, b_pad - B), (0, 0)))
    x_p = x_p.reshape(r_pad, din_p)         # contiguous: `pack` rows per lane-dense row

    in_specs = [pl.BlockSpec((tb, din_p), lambda i: (i, 0))]
    param_bytes = 0
    for p in flat_params:
        # Grid-invariant parameter blocks: fetched once, single pipeline buffer.
        in_specs.append(pl.BlockSpec(p.shape, lambda i: (0, 0),
                                     pipeline_mode=pl.Buffered(1)))
        param_bytes += _padded_bytes(p.shape[0], p.shape[1], p.dtype)

    vmem_limit = int(min(_VMEM_LIMIT_CAP,
                         max(32 * 1024 * 1024,
                             param_bytes + 2 * tile_bytes(tb) + (8 << 20))))

    flops = 2 * r_pad * sum(int(flat_params[2 * l].shape[0]) * int(flat_params[2 * l].shape[1])
                            for l in range(num_layers))
    bytes_accessed = (x_p.size * x_p.dtype.itemsize
                      + sum(p.size * p.dtype.itemsize for p in flat_params)
                      + r_pad * out_cols * x.dtype.itemsize)

    kernel = functools.partial(_mlp_kernel, num_layers)
    out_slab = pl.pallas_call(
        kernel,
        out_shape=jax.ShapeDtypeStruct((out_cols, r_pad), x.dtype),   # lane-dense slab
        grid_spec=pltpu.PrefetchScalarGridSpec(
            num_scalar_prefetch=0,
            grid=(n_tiles,),
            in_specs=in_specs,
            out_specs=pl.BlockSpec((out_cols, tb), lambda i: (0, i)),
        ),
        compiler_params=pltpu.CompilerParams(
            dimension_semantics=("parallel",),
            vmem_limit_bytes=vmem_limit,
        ),
        cost_estimate=pl.CostEstimate(
            flops=flops, transcendentals=0, bytes_accessed=bytes_accessed),
    )(x_p, *flat_params)

    # (out_cols, r_pad) -> [B, 1]: batch row r*pack + j lives at slab[j, r].
    return out_slab.T.reshape(b_pad, 1)[:B]


def dynamic_mlp_forward(x, params, *, pack_rows=_PACK_ROWS, row_tile=None):
    """Convenience wrapper: preps params (bf16 / packing) then applies the kernel.
    For perf-critical loops call prepare_dynamic_mlp_params once and reuse it."""
    prep = prepare_dynamic_mlp_params(params, pack_rows=pack_rows)
    return dynamic_mlp_apply(x, prep, row_tile=row_tile)


def init_dynamic_mlp_params(key, input_dim, hidden_dims):
    """Deterministic init mirroring nn.Linear's U(-1/sqrt(fan_in), 1/sqrt(fan_in))."""
    params = []
    prev = input_dim
    dims = list(hidden_dims) + [1]
    for d in dims:
        key, kw, kb = jax.random.split(key, 3)
        bound = 1.0 / jnp.sqrt(jnp.float32(prev))
        w = jax.random.uniform(kw, (prev, d), jnp.float32, -bound, bound)
        b = jax.random.uniform(kb, (1, d), jnp.float32, -bound, bound)
        params.append((w, b))
        prev = d
    return params


def dynamic_mlp_reference(x, params, *, mixed_precision=False):
    """Plain-JAX reference.  mixed_precision mimics the kernel's bf16 MXU operands."""
    h = x.astype(jnp.float32)
    for i, (w, b) in enumerate(params):
        if mixed_precision:
            h = jnp.dot(h.astype(jnp.bfloat16), w.astype(jnp.bfloat16),
                        preferred_element_type=jnp.float32) + b
        else:
            h = jnp.dot(h, w, preferred_element_type=jnp.float32) + b
        if i < len(params) - 1:
            h = jnp.maximum(h, 0.0)
    return h


if __name__ == "__main__":
    key = jax.random.PRNGKey(0)
    input_dim = 16
    hidden_dims = [32, 32]
    batch = 300     # not a multiple of the pack factor: exercises padding

    kx, kp = jax.random.split(key)
    x = jax.random.normal(kx, (batch, input_dim), jnp.float32)
    params = init_dynamic_mlp_params(kp, input_dim, hidden_dims)

    ref_mixed = dynamic_mlp_reference(x, params, mixed_precision=True)
    ref_f32 = dynamic_mlp_reference(x, params, mixed_precision=False)

    # Packed path (default): 8 rows per 128-lane row, block-diagonal bf16 weights.
    prep = prepare_dynamic_mlp_params(params)
    out = jax.block_until_ready(dynamic_mlp_apply(x, prep))
    assert out.shape == (batch, 1), out.shape
    assert jnp.allclose(out, ref_mixed, atol=2e-3, rtol=2e-3), \
        float(jnp.max(jnp.abs(out - ref_mixed)))
    assert jnp.allclose(out, ref_f32, atol=5e-2, rtol=5e-2), \
        float(jnp.max(jnp.abs(out - ref_f32)))

    # Unpacked path with a forced 128-row tile: exercises the multi-step grid,
    # batch padding and the lane-dense (1, tb) output slab.
    out2 = jax.block_until_ready(
        dynamic_mlp_forward(x, params, pack_rows=1, row_tile=128))
    assert out2.shape == (batch, 1), out2.shape
    assert jnp.allclose(out2, ref_mixed, atol=2e-3, rtol=2e-3), \
        float(jnp.max(jnp.abs(out2 - ref_mixed)))

    print("KERNEL_OK")
</pallas_src>

<mosaic_0001>
module attributes {stable_mosaic.version = 11 : i64} {
  func.func @_mlp_kernel(%arg0: i32, %arg1: memref<40x128xf32, #tpu.memory_space<vmem>>, %arg2: memref<128x256xbf16, #tpu.memory_space<vmem>>, %arg3: memref<1x256xf32, #tpu.memory_space<vmem>>, %arg4: memref<256x256xbf16, #tpu.memory_space<vmem>>, %arg5: memref<1x256xf32, #tpu.memory_space<vmem>>, %arg6: memref<256x8xbf16, #tpu.memory_space<vmem>>, %arg7: memref<1x8xf32, #tpu.memory_space<vmem>>, %arg8: memref<8x40xf32, #tpu.memory_space<vmem>>) attributes {dimension_semantics = [#tpu.dimension_semantics<parallel>], iteration_bounds = array<i64: 1>, scalar_prefetch = 0 : i64, scratch_operands = 0 : i64, tpu.core_type = #tpu.core_type<tc>, window_params = [{transform_indices = @transform_0, window_bounds = array<i64: 40, 128>}, {pipeline_mode = #tpu.pipeline_mode<synchronous>, transform_indices = @transform_1, window_bounds = array<i64: 128, 256>}, {pipeline_mode = #tpu.pipeline_mode<synchronous>, transform_indices = @transform_2, window_bounds = array<i64: 1, 256>}, {pipeline_mode = #tpu.pipeline_mode<synchronous>, transform_indices = @transform_3, window_bounds = array<i64: 256, 256>}, {pipeline_mode = #tpu.pipeline_mode<synchronous>, transform_indices = @transform_4, window_bounds = array<i64: 1, 256>}, {pipeline_mode = #tpu.pipeline_mode<synchronous>, transform_indices = @transform_5, window_bounds = array<i64: 256, 8>}, {pipeline_mode = #tpu.pipeline_mode<synchronous>, transform_indices = @transform_6, window_bounds = array<i64: 1, 8>}, {transform_indices = @transform_7, window_bounds = array<i64: 8, 40>}]} {
    %c0 = arith.constant 0 : index
    %c0_0 = arith.constant 0 : index
    %0 = vector.load %arg1[%c0, %c0_0] : memref<40x128xf32, #tpu.memory_space<vmem>>, vector<40x128xf32>
    %c0_1 = arith.constant 0 : index
    %c0_2 = arith.constant 0 : index
    %1 = vector.load %arg2[%c0_1, %c0_2] : memref<128x256xbf16, #tpu.memory_space<vmem>>, vector<128x256xbf16>
    %c0_3 = arith.constant 0 : index
    %c0_4 = arith.constant 0 : index
    %2 = vector.load %arg3[%c0_3, %c0_4] : memref<1x256xf32, #tpu.memory_space<vmem>>, vector<1x256xf32>
    %3 = arith.truncf %0 : vector<40x128xf32> to vector<40x128xbf16>
    %cst = arith.constant dense<0.000000e+00> : vector<40x256xf32>
    %4 = tpu.matmul %3, %1, %cst {dimension_numbers = #tpu.dot_dimension_numbers<[1], [0], [0], [1], [0, 0, 1, 1], [], []>} : vector<40x128xbf16>, vector<128x256xbf16>, vector<40x256xf32> -> vector<40x256xf32>
    %5 = vector.broadcast %2 : vector<1x256xf32> to vector<40x256xf32>
    %6 = arith.addf %4, %5 : vector<40x256xf32>
    %cst_5 = arith.constant 0.000000e+00 : f32
    %7 = vector.broadcast %cst_5 : f32 to vector<40x256xf32>
    %8 = arith.maximumf %6, %7 : vector<40x256xf32>
    %c0_6 = arith.constant 0 : index
    %c0_7 = arith.constant 0 : index
    %9 = vector.load %arg4[%c0_6, %c0_7] : memref<256x256xbf16, #tpu.memory_space<vmem>>, vector<256x256xbf16>
    %c0_8 = arith.constant 0 : index
    %c0_9 = arith.constant 0 : index
    %10 = vector.load %arg5[%c0_8, %c0_9] : memref<1x256xf32, #tpu.memory_space<vmem>>, vector<1x256xf32>
    %11 = arith.truncf %8 : vector<40x256xf32> to vector<40x256xbf16>
    %cst_10 = arith.constant dense<0.000000e+00> : vector<40x256xf32>
    %12 = tpu.matmul %11, %9, %cst_10 {dimension_numbers = #tpu.dot_dimension_numbers<[1], [0], [0], [1], [0, 0, 1, 1], [], []>} : vector<40x256xbf16>, vector<256x256xbf16>, vector<40x256xf32> -> vector<40x256xf32>
    %13 = vector.broadcast %10 : vector<1x256xf32> to vector<40x256xf32>
    %14 = arith.addf %12, %13 : vector<40x256xf32>
    %cst_11 = arith.constant 0.000000e+00 : f32
    %15 = vector.broadcast %cst_11 : f32 to vector<40x256xf32>
    %16 = arith.maximumf %14, %15 : vector<40x256xf32>
    %c0_12 = arith.constant 0 : index
    %c0_13 = arith.constant 0 : index
    %17 = vector.load %arg6[%c0_12, %c0_13] : memref<256x8xbf16, #tpu.memory_space<vmem>>, vector<256x8xbf16>
    %c0_14 = arith.constant 0 : index
    %c0_15 = arith.constant 0 : index
    %18 = vector.load %arg7[%c0_14, %c0_15] : memref<1x8xf32, #tpu.memory_space<vmem>>, vector<1x8xf32>
    %19 = arith.truncf %16 : vector<40x256xf32> to vector<40x256xbf16>
    %cst_16 = arith.constant dense<0.000000e+00> : vector<40x8xf32>
    %20 = tpu.matmul %19, %17, %cst_16 {dimension_numbers = #tpu.dot_dimension_numbers<[1], [0], [0], [1], [0, 0, 1, 1], [], []>} : vector<40x256xbf16>, vector<256x8xbf16>, vector<40x8xf32> -> vector<40x8xf32>
    %21 = vector.broadcast %18 : vector<1x8xf32> to vector<40x8xf32>
    %22 = arith.addf %20, %21 : vector<40x8xf32>
    %23 = tpu.transpose %22, [1, 0] : vector<40x8xf32> -> vector<8x40xf32>
    %c0_17 = arith.constant 0 : index
    %c0_18 = arith.constant 0 : index
    %24 = vector.load %arg8[%c0_17, %c0_18] : memref<8x40xf32, #tpu.memory_space<vmem>>, vector<8x40xf32>
    tpu.vector_store %arg8[%c0_17, %c0_18], %23 {strides = array<i32>} : memref<8x40xf32, #tpu.memory_space<vmem>>, vector<8x40xf32>,
    return
  }
  func.func @transform_0(%arg0: i32) -> (i32, i32) {
    %c0_i32 = arith.constant 0 : i32
    %c0_i32_0 = arith.constant 0 : i32
    return %arg0, %c0_i32 : i32, i32
  }
  func.func @transform_1(%arg0: i32) -> (i32, i32) {
    %c0_i32 = arith.constant 0 : i32
    %c0_i32_0 = arith.constant 0 : i32
    %c0_i32_1 = arith.constant 0 : i32
    return %c0_i32, %c0_i32_0 : i32, i32
  }
  func.func @transform_2(%arg0: i32) -> (i32, i32) {
    %c0_i32 = arith.constant 0 : i32
    %c0_i32_0 = arith.constant 0 : i32
    %c0_i32_1 = arith.constant 0 : i32
    return %c0_i32, %c0_i32_0 : i32, i32
  }
  func.func @transform_3(%arg0: i32) -> (i32, i32) {
    %c0_i32 = arith.constant 0 : i32
    %c0_i32_0 = arith.constant 0 : i32
    %c0_i32_1 = arith.constant 0 : i32
    return %c0_i32, %c0_i32_0 : i32, i32
  }
  func.func @transform_4(%arg0: i32) -> (i32, i32) {
    %c0_i32 = arith.constant 0 : i32
    %c0_i32_0 = arith.constant 0 : i32
    %c0_i32_1 = arith.constant 0 : i32
    return %c0_i32, %c0_i32_0 : i32, i32
  }
  func.func @transform_5(%arg0: i32) -> (i32, i32) {
    %c0_i32 = arith.constant 0 : i32
    %c0_i32_0 = arith.constant 0 : i32
    %c0_i32_1 = arith.constant 0 : i32
    return %c0_i32, %c0_i32_0 : i32, i32
  }
  func.func @transform_6(%arg0: i32) -> (i32, i32) {
    %c0_i32 = arith.constant 0 : i32
    %c0_i32_0 = arith.constant 0 : i32
    %c0_i32_1 = arith.constant 0 : i32
    return %c0_i32, %c0_i32_0 : i32, i32
  }
  func.func @transform_7(%arg0: i32) -> (i32, i32) {
    %c0_i32 = arith.constant 0 : i32
    %c0_i32_0 = arith.constant 0 : i32
    return %c0_i32, %arg0 : i32, i32
  }
}

</mosaic_0001>

<bundles_post_ra>
// kernel: tpu_custom_call.1
= control target key start
LH: loop header
LB: loop body
LE: loop exit
PB: predicated region body
PF: predicated region fallthrough
CT: control target
= control target key end

     0   :  { %12 = vsyncpa [#allocation3], 0  ;;  %s1231_s0 = inlined_call_operand.hbm [shape: f32[40,128], index: 0, kind: input, shape index: {}]   ;;  %s1232_s1 = inlined_call_operand.vmem [shape: bf16[128,256], index: 1, kind: input, shape index: {}]   ;;  %s1233_s2 = inlined_call_operand.vmem [shape: f32[1,256], index: 2, kind: input, shape index: {}]   ;;  %s1234_s3 = inlined_call_operand.hbm [shape: bf16[256,256], index: 3, kind: input, shape index: {}]   ;;  %s1235_s4 = inlined_call_operand.vmem [shape: f32[1,256], index: 4, kind: input, shape index: {}]   ;;  %s1236_s5 = inlined_call_operand.vmem [shape: bf16[256,8], index: 5, kind: input, shape index: {}]   ;;  %s1237_s6 = inlined_call_operand.vmem [shape: f32[1,8], index: 6, kind: input, shape index: {}]   ;;  %s1238_s7 = inlined_call_operand.hbm [shape: f32[8,40], index: 7, kind: output, shape index: {}]  }
   0x1   :  { %13 = vsyncpa [#allocation6], 0 }
   0x2   :  { %14 = vsyncpa [#allocation4], 0  ;;  %s1037_s24 = smov [#allocation2]   ;;  %s965_s28 = scalar_lea.hbm %s1231_s0, 640 }
   0x3   :  { %s20_s25 = sshll.u32 %s1037_s24, 4  ;;  %p966_p0 = scmp.ne.s32.totalorder %s1231_s0, %s965_s28  ;;  %s21_s25 = int_to_ptr.vmem [resolvable:$true] %s20_s25 }
   0x4   :  { %p969_p1 = scmp.lt.u32.totalorder %s965_s28, %s1231_s0 }
   0x6   :  { %p971_p2 = pnand %p969_p1, %p966_p0 }
   0x8   :  { %974 = shalt.err (!%p971_p2)
}
   0x9   :  { %s975_s10 = scalar_lea.vmem %s21_s25, 640  ;;  %p980_p4 = scmp.lt.s32.totalorder %s21_s25, %s21_s25 }
   0xa   :  { %p976_p3 = scmp.ne.s32.totalorder %s21_s25, %s975_s10  ;;  %p981_p5 = scmp.lt.s32.totalorder %s975_s10, %s975_s10 }
   0xc   :  { %p982_p6 = por %p981_p5, %p980_p4 }
   0xe   :  { %p983_p7 = pnand %p982_p6, %p976_p3 }
  0x10   :  { %986 = shalt.err (!%p983_p7)
}
  0x11   :  { %s1038_s11 = smov 128   ;;  %s1039_s12 = smov 8  }
  0x12   :  { %26 = dma.hbm_to_vmem [thread:$0]  %s1231_s0, 640, %s21_s25, [#allocation3], %s1038_s11, %s1038_s11, %s1039_s12  }
  0x13   :  { %s1040_s15 = smov [#allocation5]   ;;  %s987_s19 = scalar_lea.hbm %s1234_s3, 4096 }
  0x14   :  { %s36_s16 = sshll.u32 %s1040_s15, 4  ;;  %p988_p8 = scmp.ne.s32.totalorder %s1234_s3, %s987_s19  ;;  %s37_s16 = int_to_ptr.vmem [resolvable:$true] %s36_s16 }
  0x15   :  { %p991_p9 = scmp.lt.u32.totalorder %s987_s19, %s1234_s3 }
  0x17   :  { %p993_p10 = pnand %p991_p9, %p988_p8 }
  0x19   :  { %996 = shalt.err (!%p993_p10)
}
  0x1a   :  { %s997_s24 = scalar_lea.vmem %s37_s16, 4096  ;;  %p1002_p12 = scmp.lt.s32.totalorder %s37_s16, %s37_s16 }
  0x1b   :  { %p998_p11 = scmp.ne.s32.totalorder %s37_s16, %s997_s24  ;;  %p1003_p13 = scmp.lt.s32.totalorder %s997_s24, %s997_s24 }
  0x1d   :  { %p1004_p0 = por %p1003_p13, %p1002_p12 }
  0x1f   :  { %p1005_p1 = pnand %p1004_p0, %p998_p11 }
  0x21   :  { %1008 = shalt.err (!%p1005_p1)
}
  0x22   :  { %42 = dma.hbm_to_vmem [thread:$0]  %s1234_s3, 4096, %s37_s16, [#allocation6], %s1038_s11, %s1038_s11, %s1039_s12  }
  0x23   :  { %1031 = dma.done.wait [#allocation3], 640  }
  0x24   :  { %1032 = vsyncadd [#allocation3], 4294966656 }
  0x25   :  { %1033 = dma.done.wait [#allocation6], 4096  }
  0x26   :  { %1034 = vsyncadd [#allocation6], 4294963200  ;;  %v1041_v0 = vmov 0   ;;  %v877_v1 = vld [vmem:[%s1232_s1 + $0x4] ss:$8 sps:$4 sm:$0xff]   ;;  %v58_v33 = vld [vmem:[#allocation2 + $0x10] sm:$0xff] }
  0x27   :  { %204 = vmatprep.mubr.bf16.mxu0 %v1041_v0  ;;  %v879_v2 = vld [vmem:[%s1232_s1] ss:$8 sps:$4 sm:$0xff]   ;;  %172 = vmatprep.subr.bf16.mxu0 %v877_v1  ;;  %v880_v3 = vld [vmem:[%s1232_s1 + $0x14] ss:$8 sps:$4 sm:$0xff]   ;;  %v882_v4 = vld [vmem:[%s1232_s1 + $0x10] ss:$8 sps:$4 sm:$0xff]  }
  0x28   :  { %173 = vmatpush1.bf16.msra.mxu0 %v879_v2  ;;  %v883_v5 = vld [vmem:[%s1232_s1 + $0x24] ss:$8 sps:$4 sm:$0xff]   ;;  %v885_v6 = vld [vmem:[%s1232_s1 + $0x20] ss:$8 sps:$4 sm:$0xff]   ;;  %v886_v7 = vld [vmem:[%s1232_s1 + $0x34] ss:$8 sps:$4 sm:$0xff]  }
  0x29   :  { %174 = vmatprep.subr.bf16.mxu0 %v880_v3  ;;  %v888_v8 = vld [vmem:[%s1232_s1 + $0x30] ss:$8 sps:$4 sm:$0xff]   ;;  %v889_v9 = vld [vmem:[%s1232_s1 + $0x44] ss:$8 sps:$4 sm:$0xff]   ;;  %v891_v12 = vld [vmem:[%s1232_s1 + $0x40] ss:$8 sps:$4 sm:$0xff]  }
  0x2a   :  { %v901_v10 = vld [vmem:[#allocation5 + $0x4] ss:$8 sps:$4 sm:$0xff]   ;;  %v903_v11 = vld [vmem:[#allocation5] ss:$8 sps:$4 sm:$0xff]   ;;  %v904_v13 = vld [vmem:[#allocation5 + $0x14] ss:$8 sps:$4 sm:$0xff]  }
  0x2b   :  { %v892_v14 = vld [vmem:[%s1232_s1 + $0x54] ss:$8 sps:$4 sm:$0xff]   ;;  %453 = vmatprep.subr.bf16.mxu1 %v901_v10  ;;  %v906_v15 = vld [vmem:[#allocation5 + $0x10] ss:$8 sps:$4 sm:$0xff]   ;;  %v895_v18 = vld [vmem:[%s1232_s1 + $0x64] ss:$8 sps:$4 sm:$0xff]  }
  0x2c   :  { %175 = vmatpush1.bf16.msra.mxu0 %v882_v4  ;;  %454 = vmatpush1.bf16.msra.mxu1 %v903_v11  ;;  %v907_v16 = vld [vmem:[#allocation5 + $0x24] ss:$8 sps:$4 sm:$0xff]   ;;  %v894_v17 = vld [vmem:[%s1232_s1 + $0x50] ss:$8 sps:$4 sm:$0xff]   ;;  %v910_v20 = vld [vmem:[#allocation5 + $0x34] ss:$8 sps:$4 sm:$0xff]   ;;  %v82_v4 = vlaneseq }
  0x2d   :  { %176 = vmatprep.subr.bf16.mxu0 %v883_v5  ;;  %455 = vmatprep.subr.bf16.mxu1 %v904_v13  ;;  %v909_v19 = vld [vmem:[#allocation5 + $0x20] ss:$8 sps:$4 sm:$0xff]   ;;  %v898_v22 = vld [vmem:[%s1232_s1 + $0x74] ss:$8 sps:$4 sm:$0xff]   ;;  %v912_v23 = vld [vmem:[#allocation5 + $0x30] ss:$8 sps:$4 sm:$0xff]  }
  0x2e   :  { %v897_v21 = vld [vmem:[%s1232_s1 + $0x60] ss:$8 sps:$4 sm:$0xff]   ;;  %v913_v24 = vld [vmem:[#allocation5 + $0x44] ss:$8 sps:$4 sm:$0xff]   ;;  %v900_v25 = vld [vmem:[%s1232_s1 + $0x70] ss:$8 sps:$4 sm:$0xff]  }
  0x2f   :  { %v56_v26 = vld [vmem:[#allocation2] sm:$0xff]  ;;  %v57_v27 = vld [vmem:[#allocation2 + $0x8] sm:$0xff]  ;;  %v59_v34 = vld [vmem:[#allocation2 + $0x18] sm:$0xff]  ;;  %v1191_v5 = vshrl.u32 %v82_v4, 7  ;;  %vm753_vm0 = vcmask 326656  }
  0x30   :  { %177 = vmatpush1.bf16.msra.mxu0 %v885_v6  ;;  %456 = vmatpush1.bf16.msra.mxu1 %v906_v15  ;;  %v915_v28 = vld [vmem:[#allocation5 + $0x40] ss:$8 sps:$4 sm:$0xff]   ;;  %v916_v29 = vld [vmem:[#allocation5 + $0x54] ss:$8 sps:$4 sm:$0xff]   ;;  %v78_v30 = vpack.c.bf16 %v57_v27, %v56_v26  ;;  %v918_v31 = vld [vmem:[#allocation5 + $0x50] ss:$8 sps:$4 sm:$0xff]   ;;  %v79_v37 = vpack.c.bf16 %v59_v34, %v58_v33 }
  0x31   :  { %178 = vmatprep.subr.bf16.mxu0 %v886_v7  ;;  %457 = vmatprep.subr.bf16.mxu1 %v907_v16  ;;  %v919_v32 = vld [vmem:[#allocation5 + $0x64] ss:$8 sps:$4 sm:$0xff]   ;;  %v921_v35 = vld [vmem:[#allocation5 + $0x60] ss:$8 sps:$4 sm:$0xff]   ;;  %v922_v36 = vld [vmem:[#allocation5 + $0x74] ss:$8 sps:$4 sm:$0xff]  }
  0x32   :  { %v924_v38 = vld [vmem:[#allocation5 + $0x70] ss:$8 sps:$4 sm:$0xff]   ;;  %v925_v39 = vld [vmem:[#allocation5 + $0x84] ss:$8 sps:$4 sm:$0xff]   ;;  %v927_v41 = vld [vmem:[#allocation5 + $0x80] ss:$8 sps:$4 sm:$0xff]  }
  0x33   :  { %v60_v40 = vld [vmem:[#allocation2 + $0x20] sm:$0xff]  ;;  %v931_v45 = vld [vmem:[#allocation5 + $0xa4] ss:$8 sps:$4 sm:$0xff]   ;;  %v933_v46 = vld [vmem:[#allocation5 + $0xa0] ss:$8 sps:$4 sm:$0xff]   ;;  %v84_v6 = vsub.s32 0, %v1191_v5 }
  0x34   :  { %179 = vmatpush1.bf16.msra.mxu0 %v888_v8  ;;  %458 = vmatpush1.bf16.msra.mxu1 %v909_v19  ;;  %v928_v42 = vld [vmem:[#allocation5 + $0x94] ss:$8 sps:$4 sm:$0xff]   ;;  %v80_v43 = vpack.c.bf16 %v60_v40, %v60_v40  ;;  %v930_v44 = vld [vmem:[#allocation5 + $0x90] ss:$8 sps:$4 sm:$0xff]   ;;  %v937_v49 = vld [vmem:[#allocation5 + $0xc4] ss:$8 sps:$4 sm:$0xff]  }
  0x35   :  { %180 = vmatprep.subr.bf16.mxu0 %v889_v9  ;;  %459 = vmatprep.subr.bf16.mxu1 %v910_v20  ;;  %v934_v47 = vld [vmem:[#allocation5 + $0xb4] ss:$8 sps:$4 sm:$0xff]   ;;  %v936_v48 = vld [vmem:[#allocation5 + $0xb0] ss:$8 sps:$4 sm:$0xff]   ;;  %v939_v50 = vld [vmem:[#allocation5 + $0xc0] ss:$8 sps:$4 sm:$0xff]  }
  0x36   :  { %v940_v51 = vld [vmem:[#allocation5 + $0xd4] ss:$8 sps:$4 sm:$0xff]   ;;  %v942_v52 = vld [vmem:[#allocation5 + $0xd0] ss:$8 sps:$4 sm:$0xff]   ;;  %v943_v53 = vld [vmem:[#allocation5 + $0xe4] ss:$8 sps:$4 sm:$0xff]  }
  0x37   :  { %v945_v54 = vld [vmem:[#allocation5 + $0xe0] ss:$8 sps:$4 sm:$0xff]   ;;  %v946_v55 = vld [vmem:[#allocation5 + $0xf4] ss:$8 sps:$4 sm:$0xff]   ;;  %v948_v56 = vld [vmem:[#allocation5 + $0xf0] ss:$8 sps:$4 sm:$0xff]  }
  0x38   :  { %181 = vmatpush1.bf16.msra.mxu0 %v891_v12  ;;  %460 = vmatpush1.bf16.msra.mxu1 %v912_v23  ;;  %v949_v57 = vld [vmem:[%s1236_s5 + $0x40] sm:$0xff]   ;;  %v951_v59 = vld [vmem:[%s1236_s5 + $0x48] sm:$0xff]   ;;  %v953_v61 = vld [vmem:[%s1236_s5 + $0x50] sm:$0xff]   ;;  %v88_v8 = vsub.s32 1, %v1191_v5 }
  0x39   :  { %182 = vmatprep.subr.bf16.mxu0 %v892_v14  ;;  %461 = vmatprep.subr.bf16.mxu1 %v913_v24  ;;  %v950_v58 = vld [vmem:[%s1236_s5] sm:$0xff]   ;;  %v952_v60 = vld [vmem:[%s1236_s5 + $0x8] sm:$0xff]   ;;  %v954_v62 = vld [vmem:[%s1236_s5 + $0x10] sm:$0xff]  }
  0x3a   :  { %v955_v63 = vld [vmem:[%s1236_s5 + $0x58] sm:$0xff]   ;;  %v957_v1 = vld [vmem:[%s1236_s5 + $0x60] sm:$0xff]   ;;  %v959_v3 = vld [vmem:[%s1236_s5 + $0x68] sm:$0xff]  }
  0x3b   :  { %v958_v2 = vld [vmem:[%s1236_s5 + $0x20] sm:$0xff]  }
  0x3c   :  { %183 = vmatpush1.bf16.msra.mxu0 %v894_v17  ;;  %462 = vmatpush1.bf16.msra.mxu1 %v915_v28  ;;  %v77_v7 = vld [vmem:[%s1233_s2] sm:$0x3] }
  0x3d   :  { %184 = vmatprep.subr.bf16.mxu0 %v895_v18  ;;  %463 = vmatprep.subr.bf16.mxu1 %v916_v29  ;;  %v85_v9 = vrot.slane %v77_v7, %v84_v6  ;;  %v89_v10 = vrot.slane %v77_v7, %v88_v8 }
  0x40   :  { %185 = vmatpush1.bf16.msra.mxu0 %v897_v21  ;;  %464 = vmatpush1.bf16.msra.mxu1 %v918_v31 }
  0x41   :  { %186 = vmatprep.subr.bf16.mxu0 %v898_v22  ;;  %465 = vmatprep.subr.bf16.mxu1 %v919_v32 }
  0x44   :  { %187 = vmatpush1.bf16.msra.mxu0 %v900_v25  ;;  %466 = vmatpush1.bf16.msra.mxu1 %v921_v35 }
  0x45   :  { %467 = vmatprep.subr.bf16.mxu1 %v922_v36  ;;  %836 = vmatprep.subr.bf16.mxu0 %v949_v57 }
  0x47   :  { %205 = vmatmul.mubr.bf16.vlgmr.msra.gmra.mrb[0].mxu0 %v78_v30 }
  0x48   :  { %214 = vmatprep.mubr.bf16.mxu0 %v1041_v0  ;;  %468 = vmatpush1.bf16.msra.mxu1 %v924_v38 }
  0x49   :  { %469 = vmatprep.subr.bf16.mxu1 %v925_v39  ;;  %837 = vmatpush3.bf16.msra.mxu0 %v950_v58 }
  0x4a   :  { %838 = vmatprep.subr.bf16.mxu0 %v951_v59 }
  0x4c   :  { %470 = vmatpush1.bf16.msra.mxu1 %v927_v41 }
  0x4d   :  { %471 = vmatprep.subr.bf16.mxu1 %v928_v42  ;;  %839 = vmatpush3.bf16.msra.mxu0 %v952_v60 }
  0x4e   :  { %840 = vmatprep.subr.bf16.mxu0 %v953_v61 }
  0x4f   :  { %215 = vmatmul.mubr.bf16.gmra.mrb[4].mxu0 %v79_v37 }
  0x50   :  { %224 = vmatprep.mubr.bf16.mxu0 %v1041_v0  ;;  %472 = vmatpush1.bf16.msra.mxu1 %v930_v44  ;;  %v956_v0 = vld [vmem:[%s1236_s5 + $0x18] sm:$0xff]  }
  0x51   :  { %473 = vmatprep.subr.bf16.mxu1 %v931_v45  ;;  %841 = vmatpush3.bf16.msra.mxu0 %v954_v62 }
  0x52   :  { %842 = vmatprep.subr.bf16.mxu0 %v955_v63 }
  0x54   :  { %474 = vmatpush1.bf16.msra.mxu1 %v933_v46 }
  0x55   :  { %475 = vmatprep.subr.bf16.mxu1 %v934_v47  ;;  %843 = vmatpush3.bf16.msra.mxu0 %v956_v0 }
  0x56   :  { %844 = vmatprep.subr.bf16.mxu0 %v957_v1 }
  0x57   :  { %225 = vmatmul.mubr.bf16.gmra.mrb[8].mxu0 %v80_v43 }
  0x58   :  { %476 = vmatpush1.bf16.msra.mxu1 %v936_v48 }
  0x59   :  { %477 = vmatprep.subr.bf16.mxu1 %v937_v49  ;;  %845 = vmatpush3.bf16.msra.mxu0 %v958_v2  ;;  %v960_v49 = vld [vmem:[%s1236_s5 + $0x28] sm:$0xff]  }
  0x5a   :  { %846 = vmatprep.subr.bf16.mxu0 %v959_v3 }
  0x5c   :  { %478 = vmatpush1.bf16.msra.mxu1 %v939_v50  ;;  %v961_v50 = vld [vmem:[%s1236_s5 + $0x70] sm:$0xff]  }
  0x5d   :  { %479 = vmatprep.subr.bf16.mxu1 %v940_v51  ;;  %847 = vmatpush3.bf16.msra.mxu0 %v960_v49  ;;  %v962_v51 = vld [vmem:[%s1236_s5 + $0x30] sm:$0xff]  }
  0x5e   :  { %848 = vmatprep.subr.bf16.mxu0 %v961_v50 }
  0x60   :  { %480 = vmatpush1.bf16.msra.mxu1 %v942_v52  ;;  %v963_v52 = vld [vmem:[%s1236_s5 + $0x78] sm:$0xff]  }
  0x61   :  { %481 = vmatprep.subr.bf16.mxu1 %v943_v53  ;;  %849 = vmatpush3.bf16.msra.mxu0 %v962_v51  ;;  %v964_v53 = vld [vmem:[%s1236_s5 + $0x38] sm:$0xff]  }
  0x62   :  { %850 = vmatprep.subr.bf16.mxu0 %v963_v52 }
  0x64   :  { %482 = vmatpush1.bf16.msra.mxu1 %v945_v54  ;;  %v275_v54 = vld [vmem:[%s1235_s4] sm:$0x3] }
  0x65   :  { %483 = vmatprep.subr.bf16.mxu1 %v946_v55  ;;  %851 = vmatpush3.bf16.msra.mxu0 %v964_v53  ;;  %v286_v55 = vrot.slane %v275_v54, %v84_v6 }
  0x68   :  { %484 = vmatpush1.bf16.msra.mxu1 %v948_v56  ;;  %v290_v56 = vrot.slane %v275_v54, %v88_v8 }
 0x11a   :  { %v206_v11 = vpop.f32.mrb[0].mxu0 }
 0x11b   :  { %v207_v12 = vadd.f32 %v206_v11, %v85_v9  ;;  %v208_v13 = vpop.f32.mrb[1].mxu0 }
 0x11c   :  { %v209_v14 = vadd.f32 %v208_v13, %v89_v10  ;;  %v210_v15 = vpop.f32.mrb[2].mxu0 }
 0x11d   :  { %v211_v16 = vadd.f32 %v210_v15, %v85_v9  ;;  %v212_v17 = vpop.f32.mrb[3].mxu0  ;;  %v233_v19 = vmax.f32 %v207_v12, 0.0 }
 0x11e   :  { %v213_v18 = vadd.f32 %v212_v17, %v89_v10  ;;  %v234_v21 = vmax.f32 %v209_v14, 0.0 }
 0x11f   :  { %v235_v20 = vmax.f32 %v211_v16, 0.0 }
 0x120   :  { %v236_v22 = vmax.f32 %v213_v18, 0.0 }
 0x121   :  { %v276_v23 = vpack.c.bf16 %v235_v20, %v233_v19 }
 0x122   :  { %v216_v24 = vpop.f32.mrb[4].mxu0  ;;  %v277_v25 = vpack.c.bf16 %v236_v22, %v234_v21 }
 0x123   :  { %v217_v26 = vadd.f32 %v216_v24, %v85_v9  ;;  %v218_v27 = vpop.f32.mrb[5].mxu0 }
 0x124   :  { %v219_v28 = vadd.f32 %v218_v27, %v89_v10  ;;  %v220_v29 = vpop.f32.mrb[6].mxu0  ;;  %485 = vmatprep.mubr.bf16.mxu1 %v277_v25 }
 0x125   :  { %v221_v30 = vadd.f32 %v220_v29, %v85_v9  ;;  %v222_v31 = vpop.f32.mrb[7].mxu0  ;;  %486 = vmatmul.mubr.bf16.vlgmr.msra.gmra.mrb[0].mxu1 %v276_v23  ;;  %v237_v33 = vmax.f32 %v217_v26, 0.0 }
 0x126   :  { %v223_v32 = vadd.f32 %v222_v31, %v89_v10  ;;  %v238_v35 = vmax.f32 %v219_v28, 0.0 }
 0x127   :  { %v239_v34 = vmax.f32 %v221_v30, 0.0 }
 0x128   :  { %v240_v36 = vmax.f32 %v223_v32, 0.0 }
 0x129   :  { %v278_v37 = vpack.c.bf16 %v239_v34, %v237_v33  ;;  %v819_v33 = vld [vmem:[%s1237_s6] ss:$0 sm:$0xff]  ;;  %s1042_s6 = smov [#allocation7]  }
 0x12a   :  { %v279_v38 = vpack.c.bf16 %v240_v36, %v238_v35  ;;  %v226_v39 = vpop.f32.mrb[8].mxu0  ;;  %s761_s17 = sshll.u32 %s1042_s6, 4  ;;  %s762_s17 = int_to_ptr.vmem [resolvable:$true] %s761_s17 }
 0x12b   :  { %v227_v40 = vadd.f32 %v226_v39, %v85_v9  ;;  %v228_v41 = vpop.f32.mrb[9].mxu0  ;;  %s1009_s18 = scalar_lea.vmem %s762_s17, 128  ;;  %p1014_p3 = scmp.lt.s32.totalorder %s762_s17, %s762_s17 }
 0x12c   :  { %v229_v42 = vadd.f32 %v228_v41, %v89_v10  ;;  %495 = vmatprep.mubr.bf16.mxu1 %v279_v38  ;;  %v230_v43 = vpop.f32.mrb[10].mxu0  ;;  %p1010_p2 = scmp.ne.s32.totalorder %s762_s17, %s1009_s18  ;;  %p1015_p4 = scmp.lt.s32.totalorder %s1009_s18, %s1009_s18 }
 0x12d   :  { %v241_v44 = vmax.f32 %v227_v40, 0.0  ;;  %496 = vmatmul.mubr.bf16.gmra.mrb[4].mxu1 %v278_v37  ;;  %v231_v45 = vpop.f32.mrb[11].mxu0 }
 0x12e   :  { %v242_v46 = vmax.f32 %v229_v42, 0.0  ;;  %p1016_p5 = por %p1015_p4, %p1014_p3 }
 0x12f   :  { %v280_v48 = vpack.c.bf16 %v241_v44, %v241_v44 }
 0x130   :  { %v281_v47 = vpack.c.bf16 %v242_v46, %v242_v46  ;;  %p1017_p6 = pnand %p1016_p5, %p1010_p2 }
 0x132   :  { %505 = vmatprep.mubr.bf16.mxu1 %v281_v47 }
 0x135   :  { %506 = vmatmul.mubr.bf16.gmra.mrb[8].mxu1 %v280_v48 }
 0x1f8   :  { %v487_v57 = vpop.f32.mrb[0].mxu1 }
 0x1f9   :  { %v488_v58 = vadd.f32 %v487_v57, %v286_v55  ;;  %v489_v59 = vpop.f32.mrb[1].mxu1 }
 0x1fa   :  { %v490_v60 = vadd.f32 %v489_v59, %v290_v56  ;;  %v491_v61 = vpop.f32.mrb[2].mxu1 }
 0x1fb   :  { %v492_v62 = vadd.f32 %v491_v61, %v286_v55  ;;  %v493_v63 = vpop.f32.mrb[3].mxu1  ;;  %v514_v1 = vmax.f32 %v488_v58, 0.0 }
 0x1fc   :  { %v494_v0 = vadd.f32 %v493_v63, %v290_v56  ;;  %v515_v3 = vmax.f32 %v490_v60, 0.0 }
 0x1fd   :  { %v516_v2 = vmax.f32 %v492_v62, 0.0 }
 0x1fe   :  { %v517_v4 = vmax.f32 %v494_v0, 0.0 }
 0x1ff   :  { %v557_v5 = vpack.c.bf16 %v516_v2, %v514_v1 }
 0x200   :  { %v558_v7 = vpack.c.bf16 %v517_v4, %v515_v3  ;;  %v497_v9 = vpop.f32.mrb[4].mxu1 }
 0x201   :  { %v498_v10 = vadd.f32 %v497_v9, %v286_v55  ;;  %v499_v11 = vpop.f32.mrb[5].mxu1 }
 0x202   :  { %v500_v12 = vadd.f32 %v499_v11, %v290_v56  ;;  %v501_v6 = vpop.f32.mrb[6].mxu1  ;;  %697 = vmatprep.mubr.bf16.mxu0 %v558_v7 }
 0x203   :  { %v502_v8 = vadd.f32 %v501_v6, %v286_v55  ;;  %v503_v13 = vpop.f32.mrb[7].mxu1  ;;  %698 = vmatmul.mubr.bf16.vlgmr.msra.gmra.mrb[12].mxu0 %v557_v5  ;;  %v518_v15 = vmax.f32 %v498_v10, 0.0 }
 0x204   :  { %v504_v14 = vadd.f32 %v503_v13, %v290_v56  ;;  %v519_v17 = vmax.f32 %v500_v12, 0.0 }
 0x205   :  { %v520_v16 = vmax.f32 %v502_v8, 0.0 }
 0x206   :  { %v521_v18 = vmax.f32 %v504_v14, 0.0 }
 0x207   :  { %v559_v19 = vpack.c.bf16 %v520_v16, %v518_v15 }
 0x208   :  { %v560_v20 = vpack.c.bf16 %v521_v18, %v519_v17  ;;  %v507_v21 = vpop.f32.mrb[8].mxu1 }
 0x209   :  { %v508_v22 = vadd.f32 %v507_v21, %v286_v55  ;;  %v509_v23 = vpop.f32.mrb[9].mxu1 }
 0x20a   :  { %v510_v24 = vadd.f32 %v509_v23, %v290_v56  ;;  %v511_v25 = vpop.f32.mrb[10].mxu1  ;;  %705 = vmatprep.mubr.bf16.mxu0 %v560_v20 }
 0x20b   :  { %v512_v26 = vpop.f32.mrb[11].mxu1  ;;  %706 = vmatmul.mubr.bf16.gmra.mrb[16].mxu0 %v559_v19  ;;  %v522_v28 = vmax.f32 %v508_v22, 0.0 }
 0x20c   :  { %v523_v27 = vmax.f32 %v510_v24, 0.0 }
 0x20d   :  { %v561_v30 = vpack.c.bf16 %v522_v28, %v522_v28 }
 0x20e   :  { %v562_v29 = vpack.c.bf16 %v523_v27, %v523_v27 }
 0x210   :  { %713 = vmatprep.mubr.bf16.mxu0 %v562_v29 }
 0x213   :  { %714 = vmatmul.mubr.bf16.gmra.mrb[20].mxu0 %v561_v30 }
 0x2d6   :  { %v852_v31 = vpop.f32.mrb[12].mxu0 }
 0x2d7   :  { %v853_v32 = vpop.f32.mrb[13].mxu0 }
 0x2d8   :  { %v854_v34 = vadd.f32 %v853_v32, %v852_v31  ;;  %v855_v35 = vpop.f32.mrb[14].mxu0 }
 0x2d9   :  { %v856_v36 = vpop.f32.mrb[15].mxu0 }
 0x2da   :  { %v857_v37 = vadd.f32 %v856_v36, %v855_v35  ;;  %v700_v38 = vadd.f32 %v854_v34, %v819_v33 }
 0x2dc   :  { %721 = vxpose.xlu0.b32.start [1/5] (short) (narrow) %v700_v38, 8  ;;  %v703_v40 = vadd.f32 %v857_v37, %v819_v33 }
 0x2de   :  { %v858_v39 = vpop.f32.mrb[16].mxu0 }
 0x2df   :  { %v859_v41 = vpop.f32.mrb[17].mxu0 }
 0x2e0   :  { %v860_v42 = vadd.f32 %v859_v41, %v858_v39  ;;  %v861_v43 = vpop.f32.mrb[18].mxu0  ;;  %722 = vxpose.xlu0.b32.cont [2/5] (short) (narrow) %v703_v40, 8 }
 0x2e1   :  { %v862_v44 = vpop.f32.mrb[19].mxu0 }
 0x2e2   :  { %v863_v45 = vadd.f32 %v862_v44, %v861_v43  ;;  %v708_v46 = vadd.f32 %v860_v42, %v819_v33 }
 0x2e4   :  { %723 = vxpose.xlu0.b32.cont [3/5] (short) (narrow) %v708_v46, 8  ;;  %v711_v48 = vadd.f32 %v863_v45, %v819_v33 }
 0x2e6   :  { %v864_v47 = vpop.f32.mrb[20].mxu0 }
 0x2e7   :  { %v865_v49 = vpop.f32.mrb[21].mxu0 }
 0x2e8   :  { %v866_v50 = vadd.f32 %v865_v49, %v864_v47  ;;  %v867_v51 = vpop.f32.mrb[22].mxu0  ;;  %724 = vxpose.xlu0.b32.cont [4/5] (short) (narrow) %v711_v48, 8 }
 0x2e9   :  { %v868_v52 = vpop.f32.mrb[23].mxu0 }
 0x2ea   :  { %v716_v53 = vadd.f32 %v866_v50, %v819_v33 }
 0x2ec   :  { %725 = vxpose.xlu0.b32.end [5/5] (short) (narrow) %v716_v53, 8 }
 0x35c   :  { %v737_v54 = vpop.trf.xlu0 }
 0x35d   :  { %754 = vst.msk [vmem:[#allocation7] sm:$0xff] %vm753_vm0, %v737_v54 }
 0x35e   :  { %1020 = shalt.err (!%p1017_p6)
}
 0x35f   :  { %s1021_s21 = scalar_lea.hbm %s1238_s7, 128 }
 0x360   :  { %p1022_p7 = scmp.ne.s32.totalorder %s1238_s7, %s1021_s21  ;;  %p1025_p8 = scmp.lt.u32.totalorder %s1021_s21, %s1238_s7 }
 0x362   :  { %p1027_p9 = pnand %p1025_p8, %p1022_p7 }
 0x364   :  { %1030 = shalt.err (!%p1027_p9)
}
 0x365   :  { %764 = dma.vmem_to_hbm [thread:$0]  %s762_s17, 128, %s1238_s7, [#allocation4]  }
 0x366   :  { %1035 = dma.done.wait [#allocation4], 128  }
 0x367   :  { %1036 = vsyncadd [#allocation4], 4294967168 }
 0x368   :  { %768 = vsyncpa [#allocation3], 1 }
 0x369   :  { %769 = vsyncpa [#allocation6], 1 }
 0x36a   :  { %770 = vsyncpa [#allocation4], 1 }

</bundles_post_ra>
